<compile_context>
chip_gen: v7x
topology: tpu7x:2x2x1
jax: 0.10.0
libtpu: 0.0.40
codegen_flags: <defaults>
</compile_context>

<pallas_src>
import functools
import math

import jax
import jax.numpy as jnp
from jax.experimental import pallas as pl
from jax.experimental.pallas import tpu as pltpu


def _round_up(x: int, m: int) -> int:
    return ((x + m - 1) // m) * m


def _lcm(a: int, b: int) -> int:
    return a * b // math.gcd(a, b)


def _sinusoidal_packed_kernel(x_ref, expand_ref, freq_ref, phase_ref, out_ref, *, group: int):
    # x_ref:      (TILE_R, group)  positions; `group` consecutive original rows per packed row
    # expand_ref: (group, L)       0/1 matrix, expand_ref[k, l] = (l // dim == k)
    # freq_ref:   (1, L)           freq[(l % dim) % half]
    # phase_ref:  (1, L)           0 for sin lanes, pi/2 for cos lanes
    # out_ref:    (TILE_R, L)      lane-dense packed output block
    xb = x_ref[...]

    # Replicate each position across its dim-wide lane slot with an exact 0/1 select-sum
    # (pure VPU broadcasts + mul/add; no MXU precision concerns, no cross-lane relayout).
    # `group` is small (128/dim for typical dims), so this is statically unrolled.
    x_lanes = xb[:, 0:1] * expand_ref[0:1, :]
    for k in range(1, group):
        x_lanes = x_lanes + xb[:, k:k + 1] * expand_ref[k:k + 1, :]

    # sin-half and cos-half in one pass: cos(t) = sin(t + pi/2).
    out_ref[...] = jnp.sin(x_lanes * freq_ref[...] + phase_ref[...]).astype(out_ref.dtype)


def sinusoidal_pos_emb(x, dim: int, theta: float = 10000.0, *,
                       out_dtype=jnp.float32, block_rows: int | None = None):
    """x: (N,) positions. Returns (N, dim) sinusoidal embeddings (matches the PyTorch module)."""
    assert dim % 2 == 0 and dim >= 4, "dim must be even and >= 4 (half_dim-1 in denominator)"
    n = int(x.shape[0])
    half = dim // 2
    theta = float(theta)

    # Packed lane-dense geometry.
    lane_width = _lcm(dim, 128)           # L: multiple of 128 -> unmasked full-lane stores
    group = lane_width // dim             # original rows packed per lane-row
    rows = pl.cdiv(n, group)              # packed rows needed

    if block_rows is None:
        # ~1 MiB f32 output block at L=128; small enough for every generation's scoped VMEM.
        block_rows = max(8, min(_round_up(rows, 8), 2048))
    block_rows = _round_up(block_rows, 8)
    rows_pad = _round_up(rows, block_rows)
    n_pad = rows_pad * group
    grid = (rows_pad // block_rows,)

    x_f32 = x.astype(jnp.float32)
    x_packed = jnp.pad(x_f32, (0, n_pad - n)).reshape(rows_pad, group)

    # Constants computed once in the wrapper (cheap XLA), passed as tiny VMEM-resident inputs.
    scale = math.log(theta) / (half - 1)
    inv_freq = jnp.exp(-scale * jnp.arange(half, dtype=jnp.float32))             # (half,)
    col = jnp.arange(lane_width, dtype=jnp.int32) % dim                          # (L,)
    freq_row = inv_freq[col % half][None, :]                                     # (1, L)
    phase_row = jnp.where(col >= half,
                          jnp.float32(math.pi / 2.0),
                          jnp.float32(0.0))[None, :]                             # (1, L)
    slot = jnp.arange(lane_width, dtype=jnp.int32) // dim                        # (L,)
    expand = (slot[None, :] ==
              jnp.arange(group, dtype=jnp.int32)[:, None]).astype(jnp.float32)   # (group, L)

    kernel = functools.partial(_sinusoidal_packed_kernel, group=group)

    out_packed = pl.pallas_call(
        kernel,
        out_shape=jax.ShapeDtypeStruct((rows_pad, lane_width), out_dtype),
        grid_spec=pltpu.PrefetchScalarGridSpec(
            num_scalar_prefetch=0,
            grid=grid,
            in_specs=[
                pl.BlockSpec((block_rows, group), lambda i: (i, 0)),   # positions (tiled)
                pl.BlockSpec((group, lane_width), lambda i: (0, 0)),   # expansion matrix (const)
                pl.BlockSpec((1, lane_width), lambda i: (0, 0)),       # freq row (const)
                pl.BlockSpec((1, lane_width), lambda i: (0, 0)),       # phase row (const)
            ],
            out_specs=pl.BlockSpec((block_rows, lane_width), lambda i: (i, 0)),
        ),
        compiler_params=pltpu.CompilerParams(
            dimension_semantics=("parallel",),
        ),
        cost_estimate=pl.CostEstimate(
            flops=2 * rows_pad * lane_width * (group + 1),
            transcendentals=rows_pad * lane_width,
            bytes_accessed=4 * (n_pad + group * lane_width + 2 * lane_width)
                           + rows_pad * lane_width * jnp.dtype(out_dtype).itemsize,
        ),
    )(x_packed, expand, freq_row, phase_row)

    # Row-major un-pack: (rows_pad, L) -> (rows_pad*group, dim) -> trim padding.
    return out_packed.reshape(rows_pad * group, dim)[:n]


def sinusoidal_pos_emb_reference(x, dim: int, theta: float = 10000.0):
    """Plain-XLA reference (also the recommended path for tiny N)."""
    half = dim // 2
    scale = math.log(theta) / (half - 1)
    freq = jnp.exp(jnp.arange(half, dtype=jnp.float32) * -scale)
    emb = x[:, None].astype(jnp.float32) * freq[None, :]
    return jnp.concatenate((jnp.sin(emb), jnp.cos(emb)), axis=-1)


if __name__ == "__main__":
    k1, k2 = jax.random.split(jax.random.PRNGKey(0))

    # SinusoidalPosEmb(dim=32), positions x: (N,)
    N, DIM = 256, 32
    x = jax.random.uniform(k1, (N,), dtype=jnp.float32, minval=0.0, maxval=100.0)

    out = sinusoidal_pos_emb(x, DIM)
    out = jax.block_until_ready(out)
    ref = sinusoidal_pos_emb_reference(x, DIM)
    assert out.shape == (N, DIM)
    # atol 2e-5: cos is computed as sin(t + pi/2); for |t| <= 100 the f32 rounding of the
    # added pi/2 contributes at most a few 1e-6 of absolute deviation vs an exact cos.
    assert jnp.allclose(out, ref, atol=2e-5, rtol=2e-5), (
        f"mismatch vs reference, max abs err = {float(jnp.max(jnp.abs(out - ref)))}")

    # Second config: non-divisible N exercises the padding path and a different group size.
    N2, DIM2 = 50, 64
    x2 = jax.random.uniform(k2, (N2,), dtype=jnp.float32, minval=0.0, maxval=100.0)
    out2 = jax.block_until_ready(sinusoidal_pos_emb(x2, DIM2))
    ref2 = sinusoidal_pos_emb_reference(x2, DIM2)
    assert out2.shape == (N2, DIM2)
    assert jnp.allclose(out2, ref2, atol=2e-5, rtol=2e-5), (
        f"mismatch vs reference (cfg 2), max abs err = {float(jnp.max(jnp.abs(out2 - ref2)))}")

    print("KERNEL_OK")
</pallas_src>

<mosaic_0001>
module attributes {stable_mosaic.version = 11 : i64} {
  func.func @_sinusoidal_packed_kernel(%arg0: i32, %arg1: memref<64x4xf32, #tpu.memory_space<vmem>>, %arg2: memref<4x128xf32, #tpu.memory_space<vmem>>, %arg3: memref<1x128xf32, #tpu.memory_space<vmem>>, %arg4: memref<1x128xf32, #tpu.memory_space<vmem>>, %arg5: memref<64x128xf32, #tpu.memory_space<vmem>>) attributes {dimension_semantics = [#tpu.dimension_semantics<parallel>], iteration_bounds = array<i64: 1>, scalar_prefetch = 0 : i64, scratch_operands = 0 : i64, tpu.core_type = #tpu.core_type<tc>, window_params = [{transform_indices = @transform_0, window_bounds = array<i64: 64, 4>}, {pipeline_mode = #tpu.pipeline_mode<synchronous>, transform_indices = @transform_1, window_bounds = array<i64: 4, 128>}, {pipeline_mode = #tpu.pipeline_mode<synchronous>, transform_indices = @transform_2, window_bounds = array<i64: 1, 128>}, {pipeline_mode = #tpu.pipeline_mode<synchronous>, transform_indices = @transform_3, window_bounds = array<i64: 1, 128>}, {transform_indices = @transform_4, window_bounds = array<i64: 64, 128>}]} {
    %c0 = arith.constant 0 : index
    %c0_0 = arith.constant 0 : index
    %0 = vector.load %arg1[%c0, %c0_0] : memref<64x4xf32, #tpu.memory_space<vmem>>, vector<64x4xf32>
    %1 = vector.extract_strided_slice %0 {offsets = [0, 0], sizes = [64, 1], strides = [1, 1]} : vector<64x4xf32> to vector<64x1xf32>
    %c0_1 = arith.constant 0 : index
    %c0_2 = arith.constant 0 : index
    %2 = vector.load %arg2[%c0_1, %c0_2] : memref<4x128xf32, #tpu.memory_space<vmem>>, vector<1x128xf32>
    %3 = vector.broadcast %1 : vector<64x1xf32> to vector<64x128xf32>
    %4 = vector.broadcast %2 : vector<1x128xf32> to vector<64x128xf32>
    %5 = arith.mulf %3, %4 : vector<64x128xf32>
    %6 = vector.extract_strided_slice %0 {offsets = [0, 1], sizes = [64, 1], strides = [1, 1]} : vector<64x4xf32> to vector<64x1xf32>
    %c1 = arith.constant 1 : index
    %c0_3 = arith.constant 0 : index
    %7 = vector.load %arg2[%c1, %c0_3] : memref<4x128xf32, #tpu.memory_space<vmem>>, vector<1x128xf32>
    %8 = vector.broadcast %6 : vector<64x1xf32> to vector<64x128xf32>
    %9 = vector.broadcast %7 : vector<1x128xf32> to vector<64x128xf32>
    %10 = arith.mulf %8, %9 : vector<64x128xf32>
    %11 = arith.addf %5, %10 : vector<64x128xf32>
    %12 = vector.extract_strided_slice %0 {offsets = [0, 2], sizes = [64, 1], strides = [1, 1]} : vector<64x4xf32> to vector<64x1xf32>
    %c2 = arith.constant 2 : index
    %c0_4 = arith.constant 0 : index
    %13 = vector.load %arg2[%c2, %c0_4] : memref<4x128xf32, #tpu.memory_space<vmem>>, vector<1x128xf32>
    %14 = vector.broadcast %12 : vector<64x1xf32> to vector<64x128xf32>
    %15 = vector.broadcast %13 : vector<1x128xf32> to vector<64x128xf32>
    %16 = arith.mulf %14, %15 : vector<64x128xf32>
    %17 = arith.addf %11, %16 : vector<64x128xf32>
    %18 = vector.extract_strided_slice %0 {offsets = [0, 3], sizes = [64, 1], strides = [1, 1]} : vector<64x4xf32> to vector<64x1xf32>
    %c3 = arith.constant 3 : index
    %c0_5 = arith.constant 0 : index
    %19 = vector.load %arg2[%c3, %c0_5] : memref<4x128xf32, #tpu.memory_space<vmem>>, vector<1x128xf32>
    %20 = vector.broadcast %18 : vector<64x1xf32> to vector<64x128xf32>
    %21 = vector.broadcast %19 : vector<1x128xf32> to vector<64x128xf32>
    %22 = arith.mulf %20, %21 : vector<64x128xf32>
    %23 = arith.addf %17, %22 : vector<64x128xf32>
    %c0_6 = arith.constant 0 : index
    %c0_7 = arith.constant 0 : index
    %24 = vector.load %arg3[%c0_6, %c0_7] : memref<1x128xf32, #tpu.memory_space<vmem>>, vector<1x128xf32>
    %25 = vector.broadcast %24 : vector<1x128xf32> to vector<64x128xf32>
    %26 = arith.mulf %23, %25 : vector<64x128xf32>
    %c0_8 = arith.constant 0 : index
    %c0_9 = arith.constant 0 : index
    %27 = vector.load %arg4[%c0_8, %c0_9] : memref<1x128xf32, #tpu.memory_space<vmem>>, vector<1x128xf32>
    %28 = vector.broadcast %27 : vector<1x128xf32> to vector<64x128xf32>
    %29 = arith.addf %26, %28 : vector<64x128xf32>
    %30 = math.sin %29 : vector<64x128xf32>
    %c0_10 = arith.constant 0 : index
    %c0_11 = arith.constant 0 : index
    %31 = vector.load %arg5[%c0_10, %c0_11] : memref<64x128xf32, #tpu.memory_space<vmem>>, vector<64x128xf32>
    tpu.vector_store %arg5[%c0_10, %c0_11], %30 {strides = array<i32>} : memref<64x128xf32, #tpu.memory_space<vmem>>, vector<64x128xf32>,
    return
  }
  func.func @transform_0(%arg0: i32) -> (i32, i32) {
    %c0_i32 = arith.constant 0 : i32
    %c0_i32_0 = arith.constant 0 : i32
    return %arg0, %c0_i32 : i32, i32
  }
  func.func @transform_1(%arg0: i32) -> (i32, i32) {
    %c0_i32 = arith.constant 0 : i32
    %c0_i32_0 = arith.constant 0 : i32
    %c0_i32_1 = arith.constant 0 : i32
    return %c0_i32, %c0_i32_0 : i32, i32
  }
  func.func @transform_2(%arg0: i32) -> (i32, i32) {
    %c0_i32 = arith.constant 0 : i32
    %c0_i32_0 = arith.constant 0 : i32
    %c0_i32_1 = arith.constant 0 : i32
    return %c0_i32, %c0_i32_0 : i32, i32
  }
  func.func @transform_3(%arg0: i32) -> (i32, i32) {
    %c0_i32 = arith.constant 0 : i32
    %c0_i32_0 = arith.constant 0 : i32
    %c0_i32_1 = arith.constant 0 : i32
    return %c0_i32, %c0_i32_0 : i32, i32
  }
  func.func @transform_4(%arg0: i32) -> (i32, i32) {
    %c0_i32 = arith.constant 0 : i32
    %c0_i32_0 = arith.constant 0 : i32
    return %arg0, %c0_i32 : i32, i32
  }
}

</mosaic_0001>

<bundles_post_ra>
// kernel: tpu_custom_call.1
= control target key start
LH: loop header
LB: loop body
LE: loop exit
PB: predicated region body
PF: predicated region fallthrough
CT: control target
= control target key end

     0   :  { %v1274_v2 = vmov 0   ;;  %s2031_s0 = inlined_call_operand.vmem [shape: f32[64,4], index: 0, kind: input, shape index: {}]   ;;  %s2032_s1 = inlined_call_operand.vmem [shape: f32[4,128], index: 1, kind: input, shape index: {}]   ;;  %s2033_s2 = inlined_call_operand.vmem [shape: f32[1,128], index: 2, kind: input, shape index: {}]   ;;  %s2034_s3 = inlined_call_operand.vmem [shape: f32[1,128], index: 3, kind: input, shape index: {}]   ;;  %s2035_s4 = inlined_call_operand.hbm [shape: f32[64,128], index: 4, kind: output, shape index: {}]  }
   0x1   :  { %v20_v0 = vld [vmem:[%s2031_s0 + $0x10] sm:$0xff]  ;;  %v18_v1 = vld [vmem:[%s2031_s0] sm:$0xff]  ;;  %1208 = vset.pattern.permute.xlu1 %v1274_v2  ;;  %1207 = vset.pattern.permute.xlu0 %v1274_v2  ;;  %v21_v3 = vld [vmem:[%s2031_s0 + $0x18] sm:$0xff] }
   0x2   :  { %39 = vperm.xlu1 %1208, %v20_v0   ;;  %29 = vperm.xlu0 %1207, %v18_v1   ;;  %v19_v4 = vld [vmem:[%s2031_s0 + $0x8] sm:$0xff] }
   0x3   :  { %9 = vsyncpa [#allocation3], 0  ;;  %v23_v5 = vld [vmem:[%s2031_s0 + $0x28] sm:$0xff]  ;;  %v22_v6 = vld [vmem:[%s2031_s0 + $0x20] sm:$0xff]  ;;  %v1275_v9 = vmov 1   ;;  %v1276_v10 = vmov 2  }
   0x4   :  { %v25_v7 = vld [vmem:[%s2031_s0 + $0x38] sm:$0xff]  ;;  %v24_v8 = vld [vmem:[%s2031_s0 + $0x30] sm:$0xff]  ;;  %v1277_v11 = vmov 3   ;;  %v1339_v12 = vld [vmem:[%s2032_s1] ss:$0 sm:$0xff] }
   0x5   :  { %v1125_v28 = vld [vmem:[%s2032_s1 + $0x1] ss:$0 sm:$0xff]  ;;  %v1126_v47 = vld [vmem:[%s2032_s1 + $0x2] ss:$0 sm:$0xff]  ;;  %v1364_v61 = vld [vmem:[%s2032_s1 + $0x3] ss:$0 sm:$0xff] }
   0x6   :  { %44 = vperm.xlu1 %1208, %v21_v3   ;;  %34 = vperm.xlu0 %1207, %v19_v4  }
   0xa   :  { %54 = vperm.xlu1 %1208, %v23_v5   ;;  %49 = vperm.xlu0 %1207, %v22_v6  }
   0xe   :  { %64 = vperm.xlu1 %1208, %v25_v7   ;;  %59 = vperm.xlu0 %1207, %v24_v8  }
  0x12   :  { %1210 = vset.pattern.permute.xlu1 %v1275_v9  ;;  %1209 = vset.pattern.permute.xlu0 %v1275_v9 }
  0x13   :  { %85 = vperm.xlu1 %1210, %v19_v4   ;;  %81 = vperm.xlu0 %1209, %v18_v1  }
  0x17   :  { %89 = vperm.xlu1 %1210, %v20_v0   ;;  %93 = vperm.xlu0 %1209, %v21_v3  }
  0x1b   :  { %97 = vperm.xlu1 %1210, %v22_v6   ;;  %101 = vperm.xlu0 %1209, %v23_v5  }
  0x1f   :  { %105 = vperm.xlu1 %1210, %v24_v8   ;;  %109 = vperm.xlu0 %1209, %v25_v7  }
  0x23   :  { %1211 = vset.pattern.permute.xlu1 %v1276_v10  ;;  %1212 = vset.pattern.permute.xlu0 %v1276_v10 }
  0x24   :  { %134 = vperm.xlu1 %1211, %v18_v1   ;;  %138 = vperm.xlu0 %1212, %v19_v4  }
  0x28   :  { %142 = vperm.xlu1 %1211, %v20_v0   ;;  %150 = vperm.xlu0 %1212, %v22_v6  }
  0x2c   :  { %146 = vperm.xlu1 %1211, %v21_v3   ;;  %158 = vperm.xlu0 %1212, %v24_v8  }
  0x30   :  { %154 = vperm.xlu1 %1211, %v23_v5   ;;  %1213 = vset.pattern.permute.xlu0 %v1277_v11 }
  0x31   :  { %187 = vperm.xlu0 %1213, %v18_v1  }
  0x34   :  { %162 = vperm.xlu1 %1211, %v25_v7  }
  0x35   :  { %199 = vperm.xlu0 %1213, %v21_v3  }
  0x38   :  { %1214 = vset.pattern.permute.xlu1 %v1277_v11 }
  0x39   :  { %191 = vperm.xlu1 %1214, %v19_v4   ;;  %207 = vperm.xlu0 %1213, %v23_v5  }
  0x3d   :  { %195 = vperm.xlu1 %1214, %v20_v0   ;;  %215 = vperm.xlu0 %1213, %v25_v7  }
  0x41   :  { %203 = vperm.xlu1 %1214, %v22_v6  }
  0x45   :  { %211 = vperm.xlu1 %1214, %v24_v8   ;;  %v1371_v8 = vld [vmem:[%s2033_s2] ss:$0 sm:$0xff] }
  0x81   :  { %v40_v13 = vpop.permute.xlu1 %39  ;;  %v30_v14 = vpop.permute.xlu0 %29 }
  0x82   :  { %v73_v15 = vmul.f32 %v1339_v12, %v40_v13  ;;  %v71_v58 = vmul.f32 %v1339_v12, %v30_v14  ;;  %v1376_v14 = vld [vmem:[%s2034_s3] ss:$0 sm:$0xff] }
  0x85   :  { %v45_v16 = vpop.permute.xlu1 %44  ;;  %v1342_v17 = vpop.permute.xlu0 %34 }
  0x86   :  { %v74_v3 = vmul.f32 %v1339_v12, %v45_v16 }
  0x89   :  { %v55_v18 = vpop.permute.xlu1 %54  ;;  %v50_v19 = vpop.permute.xlu0 %49 }
  0x8a   :  { %v76_v20 = vmul.f32 %v1339_v12, %v55_v18  ;;  %v75_v21 = vmul.f32 %v1339_v12, %v50_v19 }
  0x8d   :  { %v65_v22 = vpop.permute.xlu1 %64  ;;  %v60_v23 = vpop.permute.xlu0 %59 }
  0x8e   :  { %v78_v24 = vmul.f32 %v1339_v12, %v65_v22  ;;  %v77_v25 = vmul.f32 %v1339_v12, %v60_v23 }
  0x92   :  { %v86_v26 = vpop.permute.xlu1 %85  ;;  %v82_v27 = vpop.permute.xlu0 %81 }
  0x93   :  { %v116_v54 = vmul.f32 %v1125_v28, %v82_v27  ;;  %v117_v13 = vmul.f32 %v1125_v28, %v86_v26 }
  0x95   :  { %v124_v62 = vadd.f32 %v116_v54, %v71_v58  ;;  %v1278_v58 = vmov 683565275  }
  0x96   :  { %v90_v29 = vpop.permute.xlu1 %89  ;;  %v94_v30 = vpop.permute.xlu0 %93 }
  0x97   :  { %v118_v31 = vmul.f32 %v1125_v28, %v90_v29  ;;  %v119_v63 = vmul.f32 %v1125_v28, %v94_v30 }
  0x99   :  { %v126_v32 = vadd.f32 %v118_v31, %v73_v15  ;;  %v127_v9 = vadd.f32 %v119_v63, %v74_v3  ;;  %v1281_v3 = vmov 2102212464  }
  0x9a   :  { %v98_v33 = vpop.permute.xlu1 %97  ;;  %v102_v34 = vpop.permute.xlu0 %101 }
  0x9b   :  { %v120_v35 = vmul.f32 %v1125_v28, %v98_v33  ;;  %v121_v36 = vmul.f32 %v1125_v28, %v102_v34 }
  0x9d   :  { %v128_v37 = vadd.f32 %v120_v35, %v75_v21  ;;  %v129_v38 = vadd.f32 %v121_v36, %v76_v20  ;;  %v72_v21 = vmul.f32 %v1339_v12, %v1342_v17 }
  0x9e   :  { %v106_v39 = vpop.permute.xlu1 %105  ;;  %v110_v40 = vpop.permute.xlu0 %109 }
  0x9f   :  { %v122_v41 = vmul.f32 %v1125_v28, %v106_v39  ;;  %v123_v42 = vmul.f32 %v1125_v28, %v110_v40  ;;  %v125_v26 = vadd.f32 %v117_v13, %v72_v21 }
  0xa1   :  { %v130_v43 = vadd.f32 %v122_v41, %v77_v25  ;;  %v131_v44 = vadd.f32 %v123_v42, %v78_v24 }
  0xa3   :  { %v135_v45 = vpop.permute.xlu1 %134  ;;  %v139_v46 = vpop.permute.xlu0 %138 }
  0xa4   :  { %v169_v59 = vmul.f32 %v1126_v47, %v135_v45  ;;  %v170_v22 = vmul.f32 %v1126_v47, %v139_v46 }
  0xa6   :  { %v177_v4 = vadd.f32 %v169_v59, %v124_v62  ;;  %v178_v30 = vadd.f32 %v170_v22, %v125_v26  ;;  %v1279_v62 = vmov 2475754826  }
  0xa7   :  { %v143_v48 = vpop.permute.xlu1 %142  ;;  %v151_v49 = vpop.permute.xlu0 %150 }
  0xa8   :  { %v171_v50 = vmul.f32 %v1126_v47, %v143_v48  ;;  %v173_v51 = vmul.f32 %v1126_v47, %v151_v49 }
  0xaa   :  { %v1354_v52 = vadd.f32 %v171_v50, %v126_v32  ;;  %v1356_v53 = vadd.f32 %v173_v51, %v128_v37 }
  0xab   :  { %v147_v55 = vpop.permute.xlu1 %146  ;;  %v159_v56 = vpop.permute.xlu0 %158 }
  0xac   :  { %v175_v57 = vmul.f32 %v1126_v47, %v159_v56  ;;  %v172_v5 = vmul.f32 %v1126_v47, %v147_v55 }
  0xae   :  { %v1359_v60 = vadd.f32 %v175_v57, %v130_v43  ;;  %v180_v18 = vadd.f32 %v172_v5, %v127_v9  ;;  %v1282_v5 = vmov 920167782  }
  0xaf   :  { %v155_v0 = vpop.permute.xlu1 %154 }
  0xb0   :  { %v174_v1 = vmul.f32 %v1126_v47, %v155_v0  ;;  %v188_v2 = vpop.permute.xlu0 %187 }
  0xb1   :  { %v222_v6 = vmul.f32 %v1364_v61, %v188_v2 }
  0xb2   :  { %v182_v7 = vadd.f32 %v174_v1, %v129_v38  ;;  %v1280_v1 = vmov 2131351028  }
  0xb3   :  { %v230_v10 = vadd.f32 %v222_v6, %v177_v4  ;;  %v163_v11 = vpop.permute.xlu1 %162 }
  0xb4   :  { %v176_v15 = vmul.f32 %v1126_v47, %v163_v11  ;;  %v200_v16 = vpop.permute.xlu0 %199 }
  0xb5   :  { %v245_v19 = vmul.f32 %v1371_v8, %v230_v10  ;;  %v225_v20 = vmul.f32 %v1364_v61, %v200_v16 }
  0xb6   :  { %v1382_v23 = vadd.f32 %v176_v15, %v131_v44  ;;  %v1283_v15 = vmov 1326507024  }
  0xb7   :  { %v1385_v24 = vadd.f32 %v1376_v14, %v245_v19  ;;  %v233_v25 = vadd.f32 %v225_v20, %v180_v18 }
  0xb8   :  { %v192_v27 = vpop.permute.xlu1 %191  ;;  %v208_v35 = vpop.permute.xlu0 %207 }
  0xb9   :  { %v268_v28 = vand.u32 2147483647, %v1385_v24  ;;  %v271_v29 = vand.u32 2139095040, %v1385_v24  ;;  %v248_v31 = vmul.f32 %v1371_v8, %v233_v25  ;;  %v223_v32 = vmul.f32 %v1364_v61, %v192_v27 }
  0xba   :  { %v227_v40 = vmul.f32 %v1364_v61, %v208_v35  ;;  %vm270_vm14 = vcmp.lt.s32.totalorder %v1385_v24, 0 }
  0xbb   :  { %v272_v33 = vshrl.u32 %v271_v29, 23  ;;  %v275_v12 = vand.u32 8388607, %v268_v28  ;;  %v1394_v17 = vadd.f32 %v1376_v14, %v248_v31  ;;  %v231_v34 = vadd.f32 %v223_v32, %v178_v30 }
  0xbc   :  { %v196_v45 = vpop.permute.xlu1 %195  ;;  %v235_v50 = vadd.f32 %v227_v40, %v182_v7  ;;  %vm1497_vm13 = vcmp.le.f32.partialorder %v268_v28, 0.7853982 }
  0xbd   :  { %v1130_v36 = vadd.s32 4294967169, %v272_v33  ;;  %v580_v37 = vand.u32 2147483647, %v1394_v17  ;;  %v583_v38 = vand.u32 2139095040, %v1394_v17  ;;  %v276_v41 = vor.u32 8388608, %v275_v12 }
  0xbe   :  { %v246_v44 = vmul.f32 %v1371_v8, %v231_v34  ;;  %v1408_v56 = vmul.f32 %v1364_v61, %v196_v45  ;;  %vm582_vm15 = vcmp.lt.s32.totalorder %v1394_v17, 0 }
  0xbf   :  { %v278_v39 = vadd.s32 1, %v1130_v36  ;;  %v584_v42 = vshrl.u32 %v583_v38, 23  ;;  %v587_v43 = vand.u32 8388607, %v580_v37  ;;  %v1402_v51 = vshll.u32 %v276_v41, 8 }
  0xc0   :  { %v1405_v55 = vadd.f32 %v1376_v14, %v246_v44 }
  0xc1   :  { %vm279_vm0 = vcmp.gt.s32.totalorder %v278_v39, 0  ;;  %v1142_v47 = vadd.s32 4294967169, %v584_v42  ;;  %v588_v54 = vor.u32 8388608, %v587_v43  ;;  %v1433_v42 = vmul.f32 %v1371_v8, %v235_v50 }
  0xc2   :  { %v280_v46 = vsel %vm279_vm0, %v278_v39, 0 }
  0xc3   :  { %v281_v48 = vshrl.u32 %v280_v46, 5  ;;  %v282_v49 = vand.u32 31, %v280_v46  ;;  %v590_v0 = vadd.s32 1, %v1142_v47  ;;  %v1430_v41 = vshll.u32 %v588_v54, 8 }
  0xc5   :  { %v283_v57 = vsub.s32 32, %v282_v49  ;;  %v285_v59 = vshll.u32 %v1278_v58, %v282_v49  ;;  %v288_v63 = vshll.u32 %v1279_v62, %v282_v49  ;;  %v291_v2 = vshll.u32 %v1280_v1, %v282_v49 }
  0xc6   :  { %v294_v4 = vshll.u32 %v1281_v3, %v282_v49  ;;  %v297_v6 = vshll.u32 %v1282_v5, %v282_v49  ;;  %vm300_vm1 = vcmp.lt.s32.totalorder %v281_v48, 1  ;;  %vm301_vm2 = vcmp.lt.s32.totalorder %v281_v48, 2 }
  0xc7   :  { %v286_v7 = vshrl.u32 %v1279_v62, %v283_v57  ;;  %v289_v9 = vshrl.u32 %v1280_v1, %v283_v57  ;;  %v292_v10 = vshrl.u32 %v1281_v3, %v283_v57  ;;  %v284_v11 = vshrl.u32 %v1278_v58, %v283_v57 }
  0xc8   :  { %v295_v13 = vshrl.u32 %v1282_v5, %v283_v57  ;;  %v298_v16 = vshrl.u32 %v1283_v15, %v283_v57  ;;  %vm302_vm3 = vcmp.lt.s32.totalorder %v281_v48, 3  ;;  %vm591_vm4 = vcmp.gt.s32.totalorder %v590_v0, 0 }
  0xc9   :  { %v287_v18 = vor.u32 %v286_v7, %v285_v59  ;;  %v290_v19 = vor.u32 %v289_v9, %v288_v63  ;;  %v293_v20 = vor.u32 %v292_v10, %v291_v2  ;;  %vm303_vm5 = vcmp.lt.s32.totalorder %v281_v48, 4 }
  0xca   :  { %v296_v21 = vor.u32 %v295_v13, %v294_v4  ;;  %v299_v22 = vor.u32 %v298_v16, %v297_v6  ;;  %v592_v25 = vsel %vm591_vm4, %v590_v0, 0  ;;  %v375_v48 = vand.u32 2139095040, %v1405_v55 }
  0xcb   :  { %v304_v26 = vsel %vm300_vm1, %v284_v11, %v287_v18  ;;  %v305_v27 = vsel %vm303_vm5, %v293_v20, 2102212464  ;;  %v308_v29 = vsel %vm300_vm1, %v287_v18, %v290_v19  ;;  %v312_v30 = vsel %vm300_vm1, %v290_v19, %v293_v20 }
  0xcc   :  { %v306_v31 = vsel %vm302_vm3, %v290_v19, %v305_v27  ;;  %v309_v32 = vsel %vm303_vm5, %v296_v21, 920167782  ;;  %v313_v33 = vsel %vm303_vm5, %v299_v22, 1326507024  ;;  %v593_v12 = vshrl.u32 %v592_v25, 5 }
  0xcd   :  { %v307_v34 = vsel %vm301_vm2, %v304_v26, %v306_v31  ;;  %v310_v35 = vsel %vm302_vm3, %v293_v20, %v309_v32  ;;  %v314_v36 = vsel %vm302_vm3, %v296_v21, %v313_v33  ;;  %v594_v38 = vand.u32 31, %v592_v25 }
  0xce   :  { %v311_v39 = vsel %vm301_vm2, %v308_v29, %v310_v35  ;;  %v315_v40 = vsel %vm301_vm2, %v312_v30, %v314_v36  ;;  %v323_v47 = vmul.u32 %v1402_v51, %v307_v34  ;;  %vm612_vm6 = vcmp.lt.s32.totalorder %v593_v12, 1 }
  0xcf   :  { %v1436_v43 = vmul.u32.u64.low %v1402_v51, %v315_v40  ;;  %v1437_v44 = vmul.u32.u64.high %v1402_v51, %v315_v40, %v1436_v43  ;;  %v1440_v45 = vmul.u32.u64.low %v1402_v51, %v311_v39  ;;  %v1441_v46 = vmul.u32.u64.high %v1402_v51, %v311_v39, %v1440_v45 }
  0xd0   :  { %v595_v49 = vsub.s32 32, %v594_v38  ;;  %v597_v54 = vshll.u32 %v1278_v58, %v594_v38  ;;  %v600_v50 = vshll.u32 %v1279_v62, %v594_v38  ;;  %v603_v57 = vshll.u32 %v1280_v1, %v594_v38 }
  0xd1   :  { %v606_v59 = vshll.u32 %v1281_v3, %v594_v38  ;;  %v609_v51 = vshll.u32 %v1282_v5, %v594_v38  ;;  %vm325_vm7 = vc.u32 %v1437_v44, %v1440_v45  ;;  %v326_v4 = vadd.s32 1, %v1441_v46 }
  0xd2   :  { %v598_v63 = vshrl.u32 %v1279_v62, %v595_v49  ;;  %v601_v0 = vshrl.u32 %v1280_v1, %v595_v49  ;;  %v604_v2 = vshrl.u32 %v1281_v3, %v595_v49  ;;  %v607_v6 = vshrl.u32 %v1282_v5, %v595_v49 }
  0xd3   :  { %vm613_vm8 = vcmp.lt.s32.totalorder %v593_v12, 2  ;;  %v610_v11 = vshrl.u32 %v1283_v15, %v595_v49  ;;  %v327_v13 = vsel %vm325_vm7, %v326_v4, %v1441_v46  ;;  %vm615_vm9 = vcmp.lt.s32.totalorder %v593_v12, 4  ;;  %v216_v4 = vpop.permute.xlu0 %215 }
  0xd4   :  { %v599_v7 = vor.u32 %v598_v63, %v597_v54  ;;  %v602_v9 = vor.u32 %v601_v0, %v600_v50  ;;  %v605_v10 = vor.u32 %v604_v2, %v603_v57  ;;  %v608_v16 = vor.u32 %v607_v6, %v606_v59 }
  0xd5   :  { %v376_v18 = vshrl.u32 %v375_v48, 23  ;;  %v328_v19 = vadd.s32 %v327_v13, %v323_v47  ;;  %v596_v20 = vshrl.u32 %v1278_v58, %v595_v49  ;;  %v611_v21 = vor.u32 %v610_v11, %v609_v51 }
  0xd6   :  { %v617_v22 = vsel %vm615_vm9, %v605_v10, 2102212464  ;;  %vm614_vm10 = vcmp.lt.s32.totalorder %v593_v12, 3  ;;  %v620_v25 = vsel %vm612_vm6, %v599_v7, %v602_v9  ;;  %v621_v26 = vsel %vm615_vm9, %v608_v16, 920167782 }
  0xd7   :  { %v624_v27 = vsel %vm612_vm6, %v602_v9, %v605_v10  ;;  %v329_v29 = vadd.s32 536870912, %v328_v19  ;;  %v616_v30 = vsel %vm612_vm6, %v596_v20, %v599_v7  ;;  %v622_v31 = vsel %vm614_vm10, %v605_v10, %v621_v26 }
  0xd8   :  { %v625_v32 = vsel %vm615_vm9, %v611_v21, 1326507024  ;;  %v618_v33 = vsel %vm614_vm10, %v602_v9, %v617_v22  ;;  %v623_v34 = vsel %vm613_vm8, %v620_v25, %v622_v31  ;;  %v1134_v36 = vadd.s32 4294967169, %v376_v18 }
  0xd9   :  { %v626_v35 = vsel %vm614_vm10, %v608_v16, %v625_v32  ;;  %v330_v38 = vshrl.u32 %v329_v29, 30  ;;  %v1467_v40 = vmul.u32.u64.low %v1430_v41, %v623_v34  ;;  %v1468_v43 = vmul.u32.u64.high %v1430_v41, %v623_v34, %v1467_v40 }
  0xda   :  { %v627_v39 = vsel %vm613_vm8, %v624_v27, %v626_v35  ;;  %v372_v49 = vand.u32 2147483647, %v1405_v55  ;;  %v382_v48 = vadd.s32 1, %v1134_v36  ;;  %v619_v50 = vsel %vm613_vm8, %v616_v30, %v618_v33 }
  0xdb   :  { %v1472_v46 = vmul.u32.u64.low %v1430_v41, %v627_v39  ;;  %v1473_v47 = vmul.u32.u64.high %v1430_v41, %v627_v39, %v1472_v46  ;;  %v331_v54 = vshll.u32 %v330_v38, 30  ;;  %v638_v59 = vadd.s32 1, %v1468_v43 }
  0xdc   :  { %vm383_vm11 = vcmp.gt.s32.totalorder %v382_v48, 0  ;;  %v232_v0 = vadd.f32 %v1408_v56, %v1354_v52  ;;  %v635_v2 = vmul.u32 %v1430_v41, %v619_v50  ;;  %v1487_v51 = vand.u32 8388607, %v372_v49 }
  0xdd   :  { %v1477_v57 = vsub.s32 %v328_v19, %v331_v54  ;;  %v384_v63 = vsel %vm383_vm11, %v382_v48, 0  ;;  %vm637_vm12 = vc.u32 %v1473_v47, %v1467_v40  ;;  %v1491_v12 = vadd.f32 %v1376_v14, %v1433_v42 }
  0xde   :  { %v354_v7 = vsub.s32 4, %v330_v38  ;;  %v639_v9 = vsel %vm637_vm12, %v638_v59, %v1468_v43  ;;  %v386_v52 = vand.u32 31, %v384_v63  ;;  %v1504_v11 = vmul.f32 %v1371_v8, %v232_v0 }
  0xdf   :  { %v334_v6 = vsub.s32 0, %v1477_v57  ;;  %v640_v41 = vadd.s32 %v639_v9, %v635_v2  ;;  %v1507_v13 = vmul.f32 %v1364_v61, %v216_v4  ;;  %v324_v16 = vadd.s32 %v1440_v45, %v1437_v44 }
  0xe0   :  { %v387_v42 = vsub.s32 32, %v386_v52  ;;  %v1511_v28 = vshrl.u32 %v384_v63, 5  ;;  %v788_v19 = vand.u32 2147483647, %v1491_v12  ;;  %v1516_v21 = vsel %vm270_vm14, %v354_v7, %v330_v38 }
  0xe1   :  { %v1131_v10 = vmin.u32 %v334_v6, %v1477_v57  ;;  %v641_v18 = vadd.s32 536870912, %v640_v41  ;;  %v380_v22 = vor.u32 8388608, %v1487_v51  ;;  %v791_v25 = vand.u32 2139095040, %v1491_v12 }
  0xe2   :  { %v389_v27 = vshll.u32 %v1278_v58, %v386_v52  ;;  %v390_v29 = vshrl.u32 %v1279_v62, %v387_v42  ;;  %v393_v44 = vshrl.u32 %v1280_v1, %v387_v42  ;;  %v392_v30 = vshll.u32 %v1279_v62, %v386_v52 }
  0xe3   :  { %v336_v20 = vclz %v1131_v10  ;;  %v642_v26 = vshrl.u32 %v641_v18, 30  ;;  %v396_v31 = vshrl.u32 %v1281_v3, %v387_v42  ;;  %v399_v32 = vshrl.u32 %v1282_v5, %v387_v42 }
  0xe4   :  { %v357_v33 = vsel %vm1497_vm13, 0, %v1516_v21  ;;  %v398_v35 = vshll.u32 %v1281_v3, %v386_v52  ;;  %vm404_vm0 = vcmp.lt.s32.totalorder %v1511_v28, 1  ;;  %v391_v36 = vor.u32 %v390_v29, %v389_v27 }
  0xe5   :  { %v1132_v45 = vadd.s32 4294967294, %v336_v20  ;;  %v643_v34 = vshll.u32 %v642_v26, 30  ;;  %v394_v38 = vor.u32 %v393_v44, %v392_v30  ;;  %v395_v39 = vshll.u32 %v1280_v1, %v386_v52 }
  0xe6   :  { %v400_v48 = vor.u32 %v399_v32, %v398_v35  ;;  %v402_v54 = vshrl.u32 %v1283_v15, %v387_v42  ;;  %vm406_vm2 = vcmp.lt.s32.totalorder %v1511_v28, 3  ;;  %v666_v2 = vsub.s32 4, %v642_v26 }
  0xe7   :  { %vm1133_vm1 = vcmp.lt.s32.totalorder %v1132_v45, 0  ;;  %v1533_v46 = vsub.s32 %v640_v41, %v643_v34  ;;  %v397_v63 = vor.u32 %v396_v31, %v395_v39  ;;  %v388_v51 = vshrl.u32 %v1278_v58, %v387_v42 }
  0xe8   :  { %v339_v43 = vsel %vm1133_vm1, 0, %v1132_v45  ;;  %v401_v4 = vshll.u32 %v1282_v5, %v386_v52  ;;  %vm407_vm3 = vcmp.lt.s32.totalorder %v1511_v28, 4  ;;  %vm1544_vm4 = vcmp.le.f32.partialorder %v580_v37, 0.7853982 }
  0xe9   :  { %v340_v50 = vsub.s32 32, %v339_v43  ;;  %v344_v59 = vsub.s32 4294967266, %v339_v43  ;;  %v646_v0 = vsub.s32 0, %v1533_v46  ;;  %v341_v6 = vshll.u32 %v1477_v57, %v339_v43 }
  0xea   :  { %v403_v18 = vor.u32 %v402_v54, %v401_v4  ;;  %v412_v42 = vsel %vm404_vm0, %v391_v36, %v394_v38  ;;  %v413_v52 = vsel %vm407_vm3, %v400_v48, 920167782  ;;  %v409_v20 = vsel %vm407_vm3, %v397_v63, 2102212464 }
  0xeb   :  { %v342_v7 = vshrl.u32 %v324_v16, %v340_v50  ;;  %v345_v9 = vadd.s32 127, %v344_v59  ;;  %v1143_v10 = vmin.u32 %v646_v0, %v1533_v46  ;;  %v414_v37 = vsel %vm406_vm2, %v397_v63, %v413_v52 }
  0xec   :  { %v636_v21 = vadd.s32 %v1467_v40, %v1473_v47  ;;  %v667_v29 = vsel %vm582_vm15, %v666_v2, %v642_v26  ;;  %vm405_vm5 = vcmp.lt.s32.totalorder %v1511_v28, 2  ;;  %v408_v45 = vsel %vm404_vm0, %v388_v51, %v391_v36 }
  0xed   :  { %v343_v57 = vor.u32 %v342_v7, %v341_v6  ;;  %v346_v16 = vshll.u32 %v345_v9, 23  ;;  %v648_v27 = vclz %v1143_v10  ;;  %v415_v30 = vsel %vm405_vm5, %v412_v42, %v414_v37 }
  0xee   :  { %v416_v31 = vsel %vm404_vm0, %v394_v38, %v397_v63  ;;  %v410_v40 = vsel %vm406_vm2, %v394_v38, %v409_v20  ;;  %v417_v47 = vsel %vm407_vm3, %v403_v18, 1326507024  ;;  %v420_v26 = vshll.u32 %v380_v22, 8 }
  0xef   :  { %v347_v44 = vor.u32 4788187, %v346_v16  ;;  %v1144_v32 = vadd.s32 4294967294, %v648_v27  ;;  %v350_v35 = vcvt.s32.f32 %v343_v57  ;;  %v418_v39 = vsel %vm406_vm2, %v400_v48, %v417_v47 }
  0xf0   :  { %v792_v36 = vshrl.u32 %v791_v25, 23  ;;  %v419_v43 = vsel %vm405_vm5, %v416_v31, %v418_v39  ;;  %v1576_v54 = vmul.u32.u64.low %v420_v26, %v415_v30  ;;  %v1577_v50 = vmul.u32.u64.high %v420_v26, %v415_v30, %v1576_v54 }
  0xf1   :  { %v348_v34 = vand.u32 2147483647, %v347_v44  ;;  %vm1145_vm6 = vcmp.lt.s32.totalorder %v1144_v32, 0  ;;  %v1579_v38 = vmul.u32.u64.low %v420_v26, %v419_v43  ;;  %v1580_v0 = vmul.u32.u64.high %v420_v26, %v419_v43, %v1579_v38 }
  0xf2   :  { %v651_v63 = vsel %vm1145_vm6, 0, %v1144_v32  ;;  %v361_v2 = vadd.s32 3, %v357_v33  ;;  %v411_v4 = vsel %vm405_vm5, %v408_v45, %v410_v40  ;;  %v669_v25 = vsel %vm1544_vm4, 0, %v667_v29 }
  0xf3   :  { %v351_v59 = vmul.f32 %v350_v35, %v348_v34  ;;  %v652_v22 = vsub.s32 32, %v651_v63  ;;  %v656_v51 = vsub.s32 4294967266, %v651_v63  ;;  %v1150_v6 = vadd.s32 4294967169, %v792_v36 }
  0xf4   :  { %v795_v7 = vand.u32 8388607, %v788_v19  ;;  %v653_v9 = vshll.u32 %v1533_v46, %v651_v63  ;;  %v430_v42 = vadd.s32 1, %v1577_v50  ;;  %v427_v52 = vmul.u32 %v420_v26, %v411_v4 }
  0xf5   :  { %v352_v48 = vxor.u32 2147483648, %v351_v59  ;;  %v654_v10 = vshrl.u32 %v636_v21, %v652_v22  ;;  %v657_v18 = vadd.s32 127, %v656_v51  ;;  %vm429_vm7 = vc.u32 %v1580_v0, %v1576_v54 }
  0xf6   :  { %v798_v28 = vadd.s32 1, %v1150_v6  ;;  %v431_v37 = vsel %vm429_vm7, %v430_v42, %v1577_v50  ;;  %v1597_v46 = vand.u32 3, %v361_v2  ;;  %v673_v29 = vadd.s32 3, %v669_v25 }
  0xf7   :  { %v353_v33 = vsel %vm270_vm14, %v352_v48, %v351_v59  ;;  %v655_v16 = vor.u32 %v654_v10, %v653_v9  ;;  %v658_v20 = vshll.u32 %v657_v18, 23  ;;  %v432_v21 = vadd.s32 %v431_v37, %v427_v52 }
  0xf8   :  { %v356_v57 = vsel %vm1497_vm13, %v1385_v24, %v353_v33  ;;  %vm799_vm8 = vcmp.gt.s32.totalorder %v798_v28, 0  ;;  %v796_v30 = vor.u32 8388608, %v795_v7  ;;  %v1601_v26 = vadd.f32 %v1507_v13, %v1382_v23 }
  0xf9   :  { %1215 = vcosq.f32 %v356_v57  ;;  %v659_v27 = vor.u32 4788187, %v658_v20  ;;  %v800_v44 = vsel %vm799_vm8, %v798_v28, 0  ;;  %v433_v45 = vadd.s32 536870912, %v432_v21 }
  0xfa   :  { %1217 = vsinq.f32 %v356_v57  ;;  %v802_v31 = vand.u32 31, %v800_v44  ;;  %v662_v40 = vcvt.s32.f32 %v655_v16  ;;  %vm364_vm9 = vcmp.eq.s32.totalorder %v1597_v46, 0 }
  0xfb   :  { %v660_v32 = vand.u32 2147483647, %v659_v27  ;;  %v434_v56 = vshrl.u32 %v433_v45, 30  ;;  %vm367_vm10 = vcmp.eq.s32.totalorder %v1597_v46, 2  ;;  %v1605_v35 = vand.u32 3, %v673_v29 }
  0xfc   :  { %v803_v47 = vsub.s32 32, %v802_v31  ;;  %vm374_vm11 = vcmp.lt.s32.totalorder %v1405_v55, 0  ;;  %v1610_v39 = vadd.f32 %v1376_v14, %v1504_v11  ;;  %vm363_vm12 = vcmp.lt.s32.totalorder %v1597_v46, 2 }
  0xfd   :  { %v663_v34 = vmul.f32 %v662_v40, %v660_v32  ;;  %v1614_v36 = vadd.s32 %v1576_v54, %v1580_v0  ;;  %v435_v23 = vshll.u32 %v434_v56, 30  ;;  %v1616_v13 = vshrl.u32 %v800_v44, 5 }
  0xfe   :  { %v1618_v43 = vshll.u32 %v796_v30, 8  ;;  %vm360_vm13 = vweird.f32 %v1385_v24  ;;  %v805_v59 = vshll.u32 %v1278_v58, %v802_v31  ;;  %v806_v63 = vshrl.u32 %v1279_v62, %v803_v47 }
  0xff   :  { %v664_v50 = vxor.u32 2147483648, %v663_v34  ;;  %v809_v11 = vshrl.u32 %v1280_v1, %v803_v47  ;;  %v1624_v38 = vsub.s32 %v432_v21, %v435_v23  ;;  %v808_v2 = vshll.u32 %v1279_v62, %v802_v31 }
 0x100   :  { %v811_v54 = vshll.u32 %v1280_v1, %v802_v31  ;;  %v812_v0 = vshrl.u32 %v1281_v3, %v803_v47  ;;  %v814_v51 = vshll.u32 %v1281_v3, %v802_v31  ;;  %v815_v4 = vshrl.u32 %v1282_v5, %v803_v47 }
 0x101   :  { %v665_v22 = vsel %vm582_vm15, %v664_v50, %v663_v34  ;;  %v818_v48 = vshrl.u32 %v1283_v15, %v803_v47  ;;  %v438_v7 = vsub.s32 0, %v1624_v38  ;;  %v458_v9 = vsub.s32 4, %v434_v56 }
 0x102   :  { %v668_v6 = vsel %vm1544_vm4, %v1394_v17, %v665_v22  ;;  %v817_v10 = vshll.u32 %v1282_v5, %v802_v31  ;;  %v807_v33 = vor.u32 %v806_v63, %v805_v59  ;;  %v810_v52 = vor.u32 %v809_v11, %v808_v2 }
 0x103   :  { %v1216_v25 = vpop.eup %1215  ;;  %1219 = vcosq.f32 %v668_v6  ;;  %v1135_v57 = vmin.u32 %v438_v7, %v1624_v38  ;;  %v813_v16 = vor.u32 %v812_v0, %v811_v54  ;;  %v816_v41 = vor.u32 %v815_v4, %v814_v51 }
 0x104   :  { %v1218_v18 = vpop.eup %1217  ;;  %v368_v42 = vxor.u32 2147483648, %v1216_v25  ;;  %1221 = vsinq.f32 %v668_v6  ;;  %v819_v37 = vor.u32 %v818_v48, %v817_v10  ;;  %v479_v21 = vand.u32 2139095040, %v1610_v39 }
 0x105   :  { %v365_v28 = vxor.u32 2147483648, %v1218_v18  ;;  %vm1647_vm14 = vcmp.le.f32.partialorder %v372_v49, 0.7853982  ;;  %v440_v44 = vclz %v1135_v57  ;;  %v459_v45 = vsel %vm374_vm11, %v458_v9, %v434_v56 }
 0x106   :  { %v369_v20 = vsel %vm367_vm10, %v368_v42, %v1218_v18  ;;  %v804_v30 = vshrl.u32 %v1278_v58, %v803_v47  ;;  %vm820_vm15 = vcmp.lt.s32.totalorder %v1616_v13, 1  ;;  %vm821_vm0 = vcmp.lt.s32.totalorder %v1616_v13, 2 }
 0x107   :  { %v366_v27 = vsel %vm364_vm9, %v1216_v25, %v365_v28  ;;  %vm823_vm1 = vcmp.lt.s32.totalorder %v1616_v13, 4  ;;  %vm676_vm2 = vcmp.eq.s32.totalorder %v1605_v35, 0  ;;  %v1136_v32 = vadd.s32 4294967294, %v440_v44 }
 0x108   :  { %v370_v31 = vsel %vm363_vm12, %v366_v27, %v369_v20  ;;  %v825_v40 = vsel %vm823_vm1, %v813_v16, 2102212464  ;;  %v828_v56 = vsel %vm820_vm15, %v807_v33, %v810_v52  ;;  %vm675_vm3 = vcmp.lt.s32.totalorder %v1605_v35, 2 }
 0x109   :  { %v371_v49 = vsel %vm360_vm13, nan, %v370_v31  ;;  %vm822_vm4 = vcmp.lt.s32.totalorder %v1616_v13, 3  ;;  %v829_v46 = vsel %vm823_vm1, %v816_v41, 920167782  ;;  %v832_v47 = vsel %vm820_vm15, %v810_v52, %v813_v16 }
 0x10a   :  { %1100 = vst [vmem:[#allocation2] sm:$0xff] %v371_v49  ;;  %v833_v34 = vsel %vm823_vm1, %v819_v37, 1326507024  ;;  %vm672_vm5 = vweird.f32 %v1394_v17  ;;  %vm1137_vm6 = vcmp.lt.s32.totalorder %v1136_v32, 0  ;;  %v824_v24 = vsel %vm820_vm15, %v804_v30, %v807_v33 }
 0x10b   :  { %v830_v23 = vsel %vm822_vm4, %v813_v16, %v829_v46  ;;  %v834_v50 = vsel %vm822_vm4, %v816_v41, %v833_v34  ;;  %v443_v59 = vsel %vm1137_vm6, 0, %v1136_v32  ;;  %v826_v63 = vsel %vm822_vm4, %v810_v52, %v825_v40 }
 0x10c   :  { %v831_v11 = vsel %vm821_vm0, %v828_v56, %v830_v23  ;;  %v835_v2 = vsel %vm821_vm0, %v832_v47, %v834_v50  ;;  %v444_v54 = vsub.s32 32, %v443_v59  ;;  %v445_v0 = vshll.u32 %v1624_v38, %v443_v59 }
 0x10d   :  { %v448_v22 = vsub.s32 4294967266, %v443_v59  ;;  %v480_v51 = vshrl.u32 %v479_v21, 23  ;;  %v1220_v4 = vpop.eup %1219  ;;  %v1677_v48 = vmul.u32.u64.low %v1618_v43, %v835_v2  ;;  %v1678_v25 = vmul.u32.u64.high %v1618_v43, %v835_v2, %v1677_v48 }
 0x10e   :  { %v1681_v6 = vmul.u32.u64.low %v1618_v43, %v831_v11  ;;  %v1682_v7 = vmul.u32.u64.high %v1618_v43, %v831_v11, %v1681_v6  ;;  %v1222_v9 = vpop.eup %1221  ;;  %v680_v10 = vxor.u32 2147483648, %v1220_v4  ;;  %v446_v18 = vshrl.u32 %v1614_v36, %v444_v54 }
 0x10f   :  { %v449_v42 = vadd.s32 127, %v448_v22  ;;  %v1138_v33 = vadd.s32 4294967169, %v480_v51  ;;  %v677_v52 = vxor.u32 2147483648, %v1222_v9  ;;  %vm679_vm7 = vcmp.eq.s32.totalorder %v1605_v35, 2 }
 0x110   :  { %v461_v38 = vsel %vm1647_vm14, 0, %v459_v45  ;;  %v827_v28 = vsel %vm821_vm0, %v824_v24, %v826_v63  ;;  %v681_v57 = vsel %vm679_vm7, %v680_v10, %v1222_v9  ;;  %v447_v16 = vor.u32 %v446_v18, %v445_v0 }
 0x111   :  { %v450_v20 = vshll.u32 %v449_v42, 23  ;;  %v486_v41 = vadd.s32 1, %v1138_v33  ;;  %v678_v37 = vsel %vm676_vm2, %v1220_v4, %v677_v52  ;;  %vm845_vm8 = vc.u32 %v1678_v25, %v1681_v6 }
 0x112   :  { %v846_v36 = vadd.s32 1, %v1682_v7  ;;  %v252_v21 = vmul.f32 %v1371_v8, %v1601_v26  ;;  %v682_v27 = vsel %vm675_vm3, %v678_v37, %v681_v57  ;;  %v843_v44 = vmul.u32 %v1618_v43, %v827_v28 }
 0x113   :  { %v451_v13 = vor.u32 4788187, %v450_v20  ;;  %v476_v45 = vand.u32 2147483647, %v1610_v39  ;;  %v683_v30 = vsel %vm672_vm5, nan, %v682_v27  ;;  %v465_v31 = vadd.s32 3, %v461_v38 }
 0x114   :  { %v847_v49 = vsel %vm845_vm8, %v846_v36, %v1682_v7  ;;  %vm487_vm9 = vcmp.gt.s32.totalorder %v486_v41, 0  ;;  %1103 = vst [vmem:[#allocation2 + $0x18] sm:$0xff] %v683_v30  ;;  %v454_v40 = vcvt.s32.f32 %v447_v16  ;;  %v1710_v17 = vadd.f32 %v1376_v14, %v252_v21 }
 0x115   :  { %v452_v32 = vand.u32 2147483647, %v451_v13  ;;  %v848_v56 = vadd.s32 %v847_v49, %v843_v44  ;;  %v488_v8 = vsel %vm487_vm9, %v486_v41, 0  ;;  %v1705_v47 = vand.u32 3, %v465_v31 }
 0x116   :  { %v490_v26 = vand.u32 31, %v488_v8  ;;  %v483_v43 = vand.u32 8388607, %v476_v45  ;;  %v489_v48 = vshrl.u32 %v488_v8, 5  ;;  %vm790_vm10 = vcmp.lt.s32.totalorder %v1491_v12, 0 }
 0x117   :  { %v455_v35 = vmul.f32 %v454_v40, %v452_v32  ;;  %v849_v46 = vadd.s32 536870912, %v848_v56  ;;  %v996_v57 = vand.u32 2147483647, %v1710_v17  ;;  %v999_v16 = vand.u32 2139095040, %v1710_v17 }
 0x118   :  { %v491_v34 = vsub.s32 32, %v490_v26  ;;  %v493_v50 = vshll.u32 %v1278_v58, %v490_v26  ;;  %v496_v59 = vshll.u32 %v1279_v62, %v490_v26  ;;  %v499_v2 = vshll.u32 %v1280_v1, %v490_v26 }
 0x119   :  { %v456_v24 = vxor.u32 2147483648, %v455_v35  ;;  %v1712_v23 = vshrl.u32 %v849_v46, 30  ;;  %v502_v22 = vshll.u32 %v1281_v3, %v490_v26  ;;  %v484_v33 = vor.u32 8388608, %v483_v43  ;;  %v204_v46 = vpop.permute.xlu1 %203 }
 0x11a   :  { %v494_v63 = vshrl.u32 %v1279_v62, %v491_v34  ;;  %v497_v11 = vshrl.u32 %v1280_v1, %v491_v34  ;;  %v500_v54 = vshrl.u32 %v1281_v3, %v491_v34  ;;  %v503_v51 = vshrl.u32 %v1282_v5, %v491_v34 }
 0x11b   :  { %v457_v0 = vsel %vm374_vm11, %v456_v24, %v455_v35  ;;  %v851_v14 = vshll.u32 %v1712_v23, 30  ;;  %v505_v52 = vshll.u32 %v1282_v5, %v490_v26  ;;  %v506_v38 = vshrl.u32 %v1283_v15, %v491_v34 }
 0x11c   :  { %v460_v4 = vsel %vm1647_vm14, %v1405_v55, %v457_v0  ;;  %v495_v7 = vor.u32 %v494_v63, %v493_v50  ;;  %v498_v9 = vor.u32 %v497_v11, %v496_v59  ;;  %v501_v18 = vor.u32 %v500_v54, %v499_v2 }
 0x11d   :  { %1223 = vcosq.f32 %v460_v4  ;;  %v1728_v10 = vsub.s32 %v848_v56, %v851_v14  ;;  %v504_v42 = vor.u32 %v503_v51, %v502_v22  ;;  %v492_v29 = vshrl.u32 %v1278_v58, %v491_v34 }
 0x11e   :  { %1225 = vsinq.f32 %v460_v4  ;;  %v507_v20 = vor.u32 %v506_v38, %v505_v52  ;;  %vm508_vm11 = vcmp.lt.s32.totalorder %v489_v48, 1  ;;  %vm510_vm12 = vcmp.lt.s32.totalorder %v489_v48, 3 }
 0x11f   :  { %v854_v28 = vsub.s32 0, %v1728_v10  ;;  %vm511_vm13 = vcmp.lt.s32.totalorder %v489_v48, 4  ;;  %vm471_vm14 = vcmp.eq.s32.totalorder %v1705_v47, 2  ;;  %v516_v36 = vsel %vm508_vm11, %v495_v7, %v498_v9 }
 0x120   :  { %v513_v37 = vsel %vm511_vm13, %v501_v18, 2102212464  ;;  %v517_v21 = vsel %vm511_vm13, %v504_v42, 920167782  ;;  %vm468_vm15 = vcmp.eq.s32.totalorder %v1705_v47, 0  ;;  %v520_v13 = vsel %vm508_vm11, %v498_v9, %v501_v18 }
 0x121   :  { %v1151_v41 = vmin.u32 %v854_v28, %v1728_v10  ;;  %v518_v27 = vsel %vm510_vm12, %v501_v18, %v517_v21  ;;  %v521_v44 = vsel %vm511_vm13, %v507_v20, 1326507024  ;;  %v524_v30 = vshll.u32 %v484_v33, 8 }
 0x122   :  { %vm467_vm0 = vcmp.lt.s32.totalorder %v1705_v47, 2  ;;  %vm1746_vm1 = vcmp.le.f32.partialorder %v788_v19, 0.7853982  ;;  %vm509_vm2 = vcmp.lt.s32.totalorder %v489_v48, 2  ;;  %v512_v32 = vsel %vm508_vm11, %v492_v29, %v495_v7 }
 0x123   :  { %v856_v49 = vclz %v1151_v41  ;;  %v514_v40 = vsel %vm510_vm12, %v498_v9, %v513_v37  ;;  %vm464_vm3 = vweird.f32 %v1405_v55  ;;  %v874_v56 = vsub.s32 4, %v1712_v23 }
 0x124   :  { %v519_v8 = vsel %vm509_vm2, %v516_v36, %v518_v27  ;;  %v522_v26 = vsel %vm510_vm12, %v504_v42, %v521_v44  ;;  %v1000_v35 = vshrl.u32 %v999_v16, 23  ;;  %v515_v50 = vsel %vm509_vm2, %v512_v32, %v514_v40 }
 0x125   :  { %v1152_v43 = vadd.s32 4294967294, %v856_v49  ;;  %v523_v19 = vsel %vm509_vm2, %v520_v13, %v522_v26  ;;  %v1755_v34 = vmul.u32.u64.low %v524_v30, %v519_v8  ;;  %v1756_v24 = vmul.u32.u64.high %v524_v30, %v519_v8, %v1755_v34 }
 0x126   :  { %v1759_v59 = vmul.u32.u64.low %v524_v30, %v523_v19  ;;  %v1760_v63 = vmul.u32.u64.high %v524_v30, %v523_v19, %v1759_v59  ;;  %v1158_v11 = vadd.s32 4294967169, %v1000_v35  ;;  %v844_v54 = vadd.s32 %v1681_v6, %v1678_v25 }
 0x127   :  { %v1224_v2 = vpop.eup %1223  ;;  %vm1153_vm4 = vcmp.lt.s32.totalorder %v1152_v43, 0  ;;  %v1003_v0 = vand.u32 8388607, %v996_v57  ;;  %v226_v14 = vmul.f32 %v1364_v61, %v204_v46  ;;  %v875_v48 = vsel %vm790_vm10, %v874_v56, %v1712_v23 }
 0x128   :  { %v1226_v22 = vpop.eup %1225  ;;  %v472_v51 = vxor.u32 2147483648, %v1224_v2  ;;  %v859_v4 = vsel %vm1153_vm4, 0, %v1152_v43  ;;  %v1006_v7 = vadd.s32 1, %v1158_v11  ;;  %v531_v33 = vmul.u32 %v524_v30, %v515_v50 }
 0x129   :  { %v469_v9 = vxor.u32 2147483648, %v1226_v22  ;;  %v860_v18 = vsub.s32 32, %v859_v4  ;;  %v864_v42 = vsub.s32 4294967266, %v859_v4  ;;  %v861_v6 = vshll.u32 %v1728_v10, %v859_v4 }
 0x12a   :  { %v473_v25 = vsel %vm471_vm14, %v472_v51, %v1226_v22  ;;  %vm533_vm5 = vc.u32 %v1760_v63, %v1755_v34  ;;  %v534_v61 = vadd.s32 1, %v1756_v24  ;;  %vm1007_vm6 = vcmp.gt.s32.totalorder %v1006_v7, 0 }
 0x12b   :  { %v470_v52 = vsel %vm468_vm15, %v1224_v2, %v469_v9  ;;  %v862_v38 = vshrl.u32 %v844_v54, %v860_v18  ;;  %v865_v23 = vadd.s32 127, %v864_v42  ;;  %v877_v29 = vsel %vm1746_vm1, 0, %v875_v48  ;;  %v1811_v42 = vld [vmem:[%s2033_s2] ss:$0 sm:$0xff] }
 0x12c   :  { %v474_v28 = vsel %vm467_vm0, %v470_v52, %v473_v25  ;;  %v535_v16 = vsel %vm533_vm5, %v534_v61, %v1756_v24  ;;  %v1008_v10 = vsel %vm1007_vm6, %v1006_v7, 0  ;;  %v881_v44 = vadd.s32 3, %v877_v29 }
 0x12d   :  { %v475_v20 = vsel %vm464_vm3, nan, %v474_v28  ;;  %v863_v41 = vor.u32 %v862_v38, %v861_v6  ;;  %v866_v37 = vshll.u32 %v865_v23, 23  ;;  %v536_v36 = vadd.s32 %v535_v16, %v531_v33 }
 0x12e   :  { %1101 = vst [vmem:[#allocation2 + $0x8] sm:$0xff] %v475_v20  ;;  %v1010_v21 = vand.u32 31, %v1008_v10  ;;  %v1004_v30 = vor.u32 8388608, %v1003_v0  ;;  %v234_v56 = vadd.f32 %v226_v14, %v1356_v53  ;;  %v1009_v8 = vshrl.u32 %v1008_v10, 5 }
 0x12f   :  { %v867_v27 = vor.u32 4788187, %v866_v37  ;;  %v537_v13 = vadd.s32 536870912, %v536_v36  ;;  %v870_v32 = vcvt.s32.f32 %v863_v41  ;;  %v1798_v54 = vand.u32 3, %v881_v44  ;;  %v1826_v37 = vld [vmem:[%s2034_s3] ss:$0 sm:$0xff] }
 0x130   :  { %v1011_v47 = vsub.s32 32, %v1010_v21  ;;  %v1019_v19 = vshll.u32 %v1280_v1, %v1010_v21  ;;  %v1013_v50 = vshll.u32 %v1278_v58, %v1010_v21  ;;  %v1016_v59 = vshll.u32 %v1279_v62, %v1010_v21 }
 0x131   :  { %v868_v49 = vand.u32 2147483647, %v867_v27  ;;  %v1785_v40 = vshrl.u32 %v537_v13, 30  ;;  %v1022_v53 = vshll.u32 %v1281_v3, %v1010_v21  ;;  %v1025_v48 = vshll.u32 %v1282_v5, %v1010_v21 }
 0x132   :  { %v1014_v55 = vshrl.u32 %v1279_v62, %v1011_v47  ;;  %v1017_v26 = vshrl.u32 %v1280_v1, %v1011_v47  ;;  %v1020_v35 = vshrl.u32 %v1281_v3, %v1011_v47  ;;  %v1023_v24 = vshrl.u32 %v1282_v5, %v1011_v47 }
 0x133   :  { %v871_v46 = vmul.f32 %v870_v32, %v868_v49  ;;  %v539_v43 = vshll.u32 %v1785_v40, 30  ;;  %v1026_v11 = vshrl.u32 %v1283_v15, %v1011_v47  ;;  %v1806_v18 = vshll.u32 %v1004_v30, 8  ;;  %v212_v30 = vpop.permute.xlu1 %211 }
 0x134   :  { %v1021_v14 = vor.u32 %v1020_v35, %v1019_v19  ;;  %v1015_v22 = vor.u32 %v1014_v55, %v1013_v50  ;;  %v1018_v51 = vor.u32 %v1017_v26, %v1016_v59  ;;  %v1024_v4 = vor.u32 %v1023_v24, %v1022_v53 }
 0x135   :  { %v872_v2 = vxor.u32 2147483648, %v871_v46  ;;  %v1800_v0 = vsub.s32 %v536_v36, %v539_v43  ;;  %v249_v33 = vmul.f32 %v1811_v42, %v234_v56  ;;  %v1012_v6 = vshrl.u32 %v1278_v58, %v1011_v47  ;;  %v1249_v43 = vld [vmem:[%s2032_s1 + $0x3] ss:$0 sm:$0xff]  ;;  %s1284_s1 = smov [#allocation2]  }
 0x136   :  { %v1027_v61 = vor.u32 %v1026_v11, %v1025_v48  ;;  %vm1031_vm7 = vcmp.lt.s32.totalorder %v1009_v8, 4  ;;  %vm478_vm8 = vcmp.lt.s32.totalorder %v1610_v39, 0  ;;  %vm1028_vm9 = vcmp.lt.s32.totalorder %v1009_v8, 1  ;;  %s1113_s20 = sshll.u32 %s1284_s1, 4  ;;  %s1114_s20 = int_to_ptr.vmem [resolvable:$true] %s1113_s20 }
 0x137   :  { %v873_v7 = vsel %vm790_vm10, %v872_v2, %v871_v46  ;;  %v542_v9 = vsub.s32 0, %v1800_v0  ;;  %v1033_v38 = vsel %vm1031_vm7, %v1021_v14, 2102212464  ;;  %vm1029_vm10 = vcmp.lt.s32.totalorder %v1009_v8, 2  ;;  %s1250_s21 = scalar_lea.vmem %s1114_s20, 1024  ;;  %p1255_p1 = scmp.lt.s32.totalorder %s1114_s20, %s1114_s20 }
 0x138   :  { %v876_v25 = vsel %vm1746_vm1, %v1491_v12, %v873_v7  ;;  %v1036_v23 = vsel %vm1028_vm9, %v1015_v22, %v1018_v51  ;;  %v1037_v28 = vsel %vm1031_vm7, %v1024_v4, 920167782  ;;  %vm1030_vm11 = vcmp.lt.s32.totalorder %v1009_v8, 3  ;;  %p1251_p0 = scmp.ne.s32.totalorder %s1114_s20, %s1250_s21  ;;  %p1256_p2 = scmp.lt.s32.totalorder %s1250_s21, %s1250_s21 }
 0x139   :  { %1227 = vcosq.f32 %v876_v25  ;;  %v1139_v52 = vmin.u32 %v542_v9, %v1800_v0  ;;  %v1032_v31 = vsel %vm1028_vm9, %v1012_v6, %v1015_v22  ;;  %v1040_v16 = vsel %vm1028_vm9, %v1018_v51, %v1021_v14 }
 0x13a   :  { %1229 = vsinq.f32 %v876_v25  ;;  %v1034_v10 = vsel %vm1030_vm11, %v1018_v51, %v1033_v38  ;;  %v1038_v20 = vsel %vm1030_vm11, %v1021_v14, %v1037_v28  ;;  %v1041_v41 = vsel %vm1031_vm7, %v1027_v61, 1326507024  ;;  %p1257_p3 = por %p1256_p2, %p1255_p1 }
 0x13b   :  { %v544_v29 = vclz %v1139_v52  ;;  %v1829_v36 = vadd.f32 %v1826_v37, %v249_v33  ;;  %vm1833_vm12 = vcmp.le.f32.partialorder %v476_v45, 0.7853982  ;;  %v1039_v13 = vsel %vm1029_vm10, %v1036_v23, %v1038_v20 }
 0x13c   :  { %v1042_v44 = vsel %vm1030_vm11, %v1024_v4, %v1041_v41  ;;  %v562_v47 = vsub.s32 4, %v1785_v40  ;;  %v1841_v32 = vmul.u32.u64.low %v1806_v18, %v1039_v13  ;;  %v1842_v56 = vmul.u32.u64.high %v1806_v18, %v1039_v13, %v1841_v32  ;;  %p1258_p4 = pnand %p1257_p3, %p1251_p0 }
 0x13d   :  { %v1140_v27 = vadd.s32 4294967294, %v544_v29  ;;  %v1043_v49 = vsel %vm1029_vm10, %v1040_v16, %v1042_v44  ;;  %v1035_v45 = vsel %vm1029_vm10, %v1032_v31, %v1034_v10  ;;  %vm880_vm14 = vweird.f32 %v1491_v12 }
 0x13e   :  { %v1847_v55 = vmul.u32.u64.low %v1806_v18, %v1043_v49  ;;  %v1848_v26 = vmul.u32.u64.high %v1806_v18, %v1043_v49, %v1847_v55  ;;  %vm883_vm15 = vcmp.lt.s32.totalorder %v1798_v54, 2  ;;  %v687_v46 = vand.u32 2139095040, %v1829_v36 }
 0x13f   :  { %vm1141_vm13 = vcmp.lt.s32.totalorder %v1140_v27, 0  ;;  %v228_v19 = vmul.f32 %v1249_v43, %v212_v30  ;;  %vm887_vm0 = vcmp.eq.s32.totalorder %v1798_v54, 2  ;;  %v532_v8 = vadd.s32 %v1755_v34, %v1760_v63 }
 0x140   :  { %v547_v35 = vsel %vm1141_vm13, 0, %v1140_v27  ;;  %v563_v59 = vsel %vm478_vm8, %v562_v47, %v1785_v40  ;;  %v1051_v53 = vmul.u32 %v1806_v18, %v1035_v45  ;;  %v1054_v11 = vadd.s32 1, %v1842_v56 }
 0x141   :  { %v548_v24 = vsub.s32 32, %v547_v35  ;;  %v552_v50 = vsub.s32 4294967266, %v547_v35  ;;  %v688_v2 = vshrl.u32 %v687_v46, 23  ;;  %v549_v22 = vshll.u32 %v1800_v0, %v547_v35 }
 0x142   :  { %vm1053_vm1 = vc.u32 %v1848_v26, %v1841_v32  ;;  %v236_v40 = vadd.f32 %v228_v19, %v1359_v60  ;;  %vm884_vm2 = vcmp.eq.s32.totalorder %v1798_v54, 0  ;;  %v565_v6 = vsel %vm1833_vm12, 0, %v563_v59 }
 0x143   :  { %v1228_v14 = vpop.eup %1227  ;;  %v550_v51 = vshrl.u32 %v532_v8, %v548_v24  ;;  %v553_v4 = vadd.s32 127, %v552_v50  ;;  %v1055_v48 = vsel %vm1053_vm1, %v1054_v11, %v1842_v56  ;;  %v1146_v7 = vadd.s32 4294967169, %v688_v2 }
 0x144   :  { %v1230_v34 = vpop.eup %1229  ;;  %v888_v63 = vxor.u32 2147483648, %v1228_v14  ;;  %v1056_v25 = vadd.s32 %v1055_v48, %v1051_v53  ;;  %v684_v28 = vand.u32 2147483647, %v1829_v36  ;;  %v251_v31 = vmul.f32 %v1811_v42, %v236_v40 }
 0x145   :  { %v885_v9 = vxor.u32 2147483648, %v1230_v34  ;;  %v551_v18 = vor.u32 %v550_v51, %v549_v22  ;;  %v554_v33 = vshll.u32 %v553_v4, 23  ;;  %v694_v61 = vadd.s32 1, %v1146_v7 }
 0x146   :  { %v889_v0 = vsel %vm887_vm0, %v888_v63, %v1230_v34  ;;  %v1057_v23 = vadd.s32 536870912, %v1056_v25  ;;  %v569_v30 = vadd.s32 3, %v565_v6  ;;  %v691_v54 = vand.u32 8388607, %v684_v28 }
 0x147   :  { %v886_v52 = vsel %vm884_vm2, %v1228_v14, %v885_v9  ;;  %v555_v38 = vor.u32 4788187, %v554_v33  ;;  %v558_v29 = vcvt.s32.f32 %v551_v18  ;;  %vm695_vm3 = vcmp.gt.s32.totalorder %v694_v61, 0 }
 0x148   :  { %v890_v60 = vsel %vm883_vm15, %v886_v52, %v889_v0  ;;  %v1880_v20 = vshrl.u32 %v1057_v23, 30  ;;  %v696_v41 = vsel %vm695_vm3, %v694_v61, 0  ;;  %v1890_v12 = vadd.f32 %v1826_v37, %v251_v31 }
 0x149   :  { %v891_v16 = vsel %vm880_vm14, nan, %v890_v60  ;;  %v556_v10 = vand.u32 2147483647, %v555_v38  ;;  %v698_v27 = vand.u32 31, %v696_v41  ;;  %v1887_v42 = vshrl.u32 %v696_v41, 5 }
 0x14a   :  { %1105 = vst [vmem:[#allocation2 + $0x28] sm:$0xff] %v891_v16  ;;  %v1059_v44 = vshll.u32 %v1880_v20, 30  ;;  %v570_v34 = vand.u32 3, %v569_v30  ;;  %v1052_v21 = vadd.s32 %v1841_v32, %v1848_v26  ;;  %v692_v48 = vor.u32 8388608, %v691_v54 }
 0x14b   :  { %v559_v13 = vmul.f32 %v558_v29, %v556_v10  ;;  %v699_v47 = vsub.s32 32, %v698_v27  ;;  %v701_v45 = vshll.u32 %v1278_v58, %v698_v27  ;;  %v704_v35 = vshll.u32 %v1279_v62, %v698_v27 }
 0x14c   :  { %v1885_v56 = vsub.s32 %v1056_v25, %v1059_v44  ;;  %v707_v8 = vshll.u32 %v1280_v1, %v698_v27  ;;  %v710_v59 = vshll.u32 %v1281_v3, %v698_v27  ;;  %v713_v51 = vshll.u32 %v1282_v5, %v698_v27 }
 0x14d   :  { %v560_v49 = vxor.u32 2147483648, %v559_v13  ;;  %v702_v55 = vshrl.u32 %v1279_v62, %v699_v47  ;;  %v705_v46 = vshrl.u32 %v1280_v1, %v699_v47  ;;  %v708_v24 = vshrl.u32 %v1281_v3, %v699_v47 }
 0x14e   :  { %v1062_v19 = vsub.s32 0, %v1885_v56  ;;  %v711_v53 = vshrl.u32 %v1282_v5, %v699_v47  ;;  %v714_v4 = vshrl.u32 %v1283_v15, %v699_v47  ;;  %v700_v7 = vshrl.u32 %v1278_v58, %v699_v47 }
 0x14f   :  { %v561_v43 = vsel %vm478_vm8, %v560_v49, %v559_v13  ;;  %v703_v50 = vor.u32 %v702_v55, %v701_v45  ;;  %v706_v2 = vor.u32 %v705_v46, %v704_v35  ;;  %v709_v14 = vor.u32 %v708_v24, %v707_v8 }
 0x150   :  { %v564_v37 = vsel %vm1833_vm12, %v1610_v39, %v561_v43  ;;  %v1159_v11 = vmin.u32 %v1062_v19, %v1885_v56  ;;  %v712_v22 = vor.u32 %v711_v53, %v710_v59  ;;  %v715_v40 = vor.u32 %v714_v4, %v713_v51 }
 0x151   :  { %1231 = vcosq.f32 %v564_v37  ;;  %vm716_vm4 = vcmp.lt.s32.totalorder %v1887_v42, 1  ;;  %v895_v9 = vand.u32 2139095040, %v1890_v12  ;;  %vm718_vm5 = vcmp.lt.s32.totalorder %v1887_v42, 3 }
 0x152   :  { %1233 = vsinq.f32 %v564_v37  ;;  %v1064_v63 = vclz %v1159_v11  ;;  %vm719_vm6 = vcmp.lt.s32.totalorder %v1887_v42, 4  ;;  %v724_v33 = vsel %vm716_vm4, %v703_v50, %v706_v2 }
 0x153   :  { %v721_v25 = vsel %vm719_vm6, %v709_v14, 2102212464  ;;  %v725_v0 = vsel %vm719_vm6, %v712_v22, 920167782  ;;  %v728_v32 = vsel %vm716_vm4, %v706_v2, %v709_v14  ;;  %v729_v26 = vsel %vm719_vm6, %v715_v40, 1326507024 }
 0x154   :  { %v1160_v18 = vadd.s32 4294967294, %v1064_v63  ;;  %vm571_vm7 = vcmp.lt.s32.totalorder %v570_v34, 2  ;;  %vm998_vm8 = vcmp.lt.s32.totalorder %v1710_v17, 0  ;;  %vm717_vm10 = vcmp.lt.s32.totalorder %v1887_v42, 2 }
 0x155   :  { %v726_v6 = vsel %vm718_vm5, %v709_v14, %v725_v0  ;;  %v730_v61 = vsel %vm718_vm5, %v712_v22, %v729_v26  ;;  %vm568_vm11 = vweird.f32 %v1610_v39  ;;  %v732_v60 = vshll.u32 %v692_v48, 8 }
 0x156   :  { %vm1161_vm9 = vcmp.lt.s32.totalorder %v1160_v18, 0  ;;  %v727_v38 = vsel %vm717_vm10, %v724_v33, %v726_v6  ;;  %v731_v23 = vsel %vm717_vm10, %v728_v32, %v730_v61  ;;  %v720_v16 = vsel %vm716_vm4, %v700_v7, %v703_v50 }
 0x157   :  { %v1067_v52 = vsel %vm1161_vm9, 0, %v1160_v18  ;;  %v722_v10 = vsel %vm718_vm5, %v706_v2, %v721_v25  ;;  %v1935_v41 = vmul.u32.u64.low %v732_v60, %v731_v23  ;;  %v1936_v27 = vmul.u32.u64.high %v732_v60, %v731_v23, %v1935_v41 }
 0x158   :  { %v1068_v29 = vsub.s32 32, %v1067_v52  ;;  %v1072_v31 = vsub.s32 4294967266, %v1067_v52  ;;  %v1938_v13 = vmul.u32.u64.low %v732_v60, %v727_v38  ;;  %v1939_v44 = vmul.u32.u64.high %v732_v60, %v727_v38, %v1938_v13 }
 0x159   :  { %v1069_v54 = vshll.u32 %v1885_v56, %v1067_v52  ;;  %v896_v45 = vshrl.u32 %v895_v9, 23  ;;  %vm575_vm12 = vcmp.eq.s32.totalorder %v570_v34, 2  ;;  %v1082_v46 = vsub.s32 4, %v1880_v20 }
 0x15a   :  { %v1070_v47 = vshrl.u32 %v1052_v21, %v1068_v29  ;;  %v1073_v49 = vadd.s32 127, %v1072_v31  ;;  %v723_v43 = vsel %vm717_vm10, %v720_v16, %v722_v10  ;;  %vm572_vm13 = vcmp.eq.s32.totalorder %v570_v34, 0 }
 0x15b   :  { %v1232_v30 = vpop.eup %1231  ;;  %v1154_v37 = vadd.s32 4294967169, %v896_v45  ;;  %vm741_vm14 = vc.u32 %v1936_v27, %v1938_v13  ;;  %v742_v56 = vadd.s32 1, %v1939_v44  ;;  %v739_v11 = vmul.u32 %v732_v60, %v723_v43 }
 0x15c   :  { %v1234_v55 = vpop.eup %1233  ;;  %v576_v35 = vxor.u32 2147483648, %v1232_v30  ;;  %v1071_v8 = vor.u32 %v1070_v47, %v1069_v54  ;;  %v1074_v24 = vshll.u32 %v1073_v49, 23  ;;  %v1083_v42 = vsel %vm998_vm8, %v1082_v46, %v1880_v20 }
 0x15d   :  { %v573_v19 = vxor.u32 2147483648, %v1234_v55  ;;  %v902_v2 = vadd.s32 1, %v1154_v37  ;;  %v743_v51 = vsel %vm741_vm14, %v742_v56, %v1939_v44  ;;  %vm1958_vm0 = vcmp.le.f32.partialorder %v996_v57, 0.7853982 }
 0x15e   :  { %v577_v50 = vsel %vm575_vm12, %v576_v35, %v1234_v55  ;;  %v1075_v53 = vor.u32 4788187, %v1074_v24  ;;  %v1078_v22 = vcvt.s32.f32 %v1071_v8  ;;  %v744_v63 = vadd.s32 %v743_v51, %v739_v11 }
 0x15f   :  { %v574_v59 = vsel %vm572_vm13, %v1232_v30, %v573_v19  ;;  %vm903_vm15 = vcmp.gt.s32.totalorder %v902_v2, 0  ;;  %v892_v34 = vand.u32 2147483647, %v1890_v12  ;;  %v1085_v20 = vsel %vm1958_vm0, 0, %v1083_v42 }
 0x160   :  { %v578_v14 = vsel %vm571_vm7, %v574_v59, %v577_v50  ;;  %v1076_v21 = vand.u32 2147483647, %v1075_v53  ;;  %v904_v7 = vsel %vm903_vm15, %v902_v2, 0  ;;  %v745_v9 = vadd.s32 536870912, %v744_v63 }
 0x161   :  { %v579_v4 = vsel %vm568_vm11, nan, %v578_v14  ;;  %v906_v39 = vand.u32 31, %v904_v7  ;;  %v1089_v0 = vadd.s32 3, %v1085_v20  ;;  %v899_v57 = vand.u32 8388607, %v892_v34 }
 0x162   :  { %1102 = vst [vmem:[#allocation2 + $0x10] sm:$0xff] %v579_v4  ;;  %v1079_v40 = vmul.f32 %v1078_v22, %v1076_v21  ;;  %v1965_v33 = vshrl.u32 %v745_v9, 30  ;;  %v905_v32 = vshrl.u32 %v904_v7, 5  ;;  %v740_v48 = vadd.s32 %v1938_v13, %v1936_v27 }
 0x163   :  { %v907_v25 = vsub.s32 32, %v906_v39  ;;  %v909_v26 = vshll.u32 %v1278_v58, %v906_v39  ;;  %v912_v52 = vshll.u32 %v1279_v62, %v906_v39  ;;  %v915_v38 = vshll.u32 %v1280_v1, %v906_v39 }
 0x164   :  { %v1080_v18 = vxor.u32 2147483648, %v1079_v40  ;;  %v747_v61 = vshll.u32 %v1965_v33, 30  ;;  %v918_v10 = vshll.u32 %v1281_v3, %v906_v39  ;;  %v900_v44 = vor.u32 8388608, %v899_v57 }
 0x165   :  { %v910_v60 = vshrl.u32 %v1279_v62, %v907_v25  ;;  %v913_v29 = vshrl.u32 %v1280_v1, %v907_v25  ;;  %v916_v31 = vshrl.u32 %v1281_v3, %v907_v25  ;;  %v919_v41 = vshrl.u32 %v1282_v5, %v907_v25 }
 0x166   :  { %v1081_v6 = vsel %vm998_vm8, %v1080_v18, %v1079_v40  ;;  %v1981_v16 = vsub.s32 %v744_v63, %v747_v61  ;;  %v921_v62 = vshll.u32 %v1282_v5, %v906_v39  ;;  %v922_v1 = vshrl.u32 %v1283_v15, %v907_v25 }
 0x167   :  { %v1084_v23 = vsel %vm1958_vm0, %v1710_v17, %v1081_v6  ;;  %v911_v30 = vor.u32 %v910_v60, %v909_v26  ;;  %v914_v54 = vor.u32 %v913_v29, %v912_v52  ;;  %v917_v49 = vor.u32 %v916_v31, %v915_v38 }
 0x168   :  { %1235 = vcosq.f32 %v1084_v23  ;;  %v750_v47 = vsub.s32 0, %v1981_v16  ;;  %v920_v45 = vor.u32 %v919_v41, %v918_v10  ;;  %v1090_v55 = vand.u32 3, %v1089_v0 }
 0x169   :  { %1237 = vsinq.f32 %v1084_v23  ;;  %vm924_vm1 = vcmp.lt.s32.totalorder %v905_v32, 1  ;;  %vm927_vm2 = vcmp.lt.s32.totalorder %v905_v32, 4  ;;  %v923_v3 = vor.u32 %v922_v1, %v921_v62 }
 0x16a   :  { %v1147_v35 = vmin.u32 %v750_v47, %v1981_v16  ;;  %v932_v46 = vsel %vm924_vm1, %v911_v30, %v914_v54  ;;  %v933_v43 = vsel %vm927_vm2, %v920_v45, 920167782  ;;  %v940_v19 = vshll.u32 %v900_v44, 8 }
 0x16b   :  { %v908_v24 = vshrl.u32 %v1278_v58, %v907_v25  ;;  %vm926_vm3 = vcmp.lt.s32.totalorder %v905_v32, 3  ;;  %v929_v37 = vsel %vm927_vm2, %v917_v49, 2102212464  ;;  %vm925_vm4 = vcmp.lt.s32.totalorder %v905_v32, 2 }
 0x16c   :  { %v752_v8 = vclz %v1147_v35  ;;  %v934_v50 = vsel %vm926_vm3, %v917_v49, %v933_v43  ;;  %v936_v56 = vsel %vm924_vm1, %v914_v54, %v917_v49  ;;  %v937_v5 = vsel %vm927_vm2, %v923_v3, 1326507024 }
 0x16d   :  { %v928_v15 = vsel %vm924_vm1, %v908_v24, %v911_v30  ;;  %v935_v53 = vsel %vm925_vm4, %v932_v46, %v934_v50  ;;  %v938_v11 = vsel %vm926_vm3, %v920_v45, %v937_v5  ;;  %v930_v2 = vsel %vm926_vm3, %v914_v54, %v929_v37 }
 0x16e   :  { %v1148_v59 = vadd.s32 4294967294, %v752_v8  ;;  %v939_v14 = vsel %vm925_vm4, %v936_v56, %v938_v11  ;;  %v1992_v22 = vmul.u32.u64.low %v940_v19, %v935_v53  ;;  %v1993_v42 = vmul.u32.u64.high %v940_v19, %v935_v53, %v1992_v22 }
 0x16f   :  { %v1995_v58 = vmul.u32.u64.low %v940_v19, %v939_v14  ;;  %v1996_v4 = vmul.u32.u64.high %v940_v19, %v939_v14, %v1995_v58  ;;  %vm1095_vm6 = vcmp.eq.s32.totalorder %v1090_v55, 2  ;;  %v931_v39 = vsel %vm925_vm4, %v928_v15, %v930_v2 }
 0x170   :  { %vm1149_vm5 = vcmp.lt.s32.totalorder %v1148_v59, 0  ;;  %vm1091_vm7 = vcmp.lt.s32.totalorder %v1090_v55, 2  ;;  %vm1092_vm8 = vcmp.eq.s32.totalorder %v1090_v55, 0  ;;  %v950_v25 = vadd.s32 1, %v1993_v42 }
 0x171   :  { %v755_v7 = vsel %vm1149_vm5, 0, %v1148_v59  ;;  %vm1088_vm9 = vweird.f32 %v1710_v17  ;;  %v947_v27 = vmul.u32 %v940_v19, %v931_v39  ;;  %vm949_vm10 = vc.u32 %v1996_v4, %v1992_v22 }
 0x172   :  { %v1236_v51 = vpop.eup %1235  ;;  %v756_v20 = vsub.s32 32, %v755_v7  ;;  %v760_v9 = vsub.s32 4294967266, %v755_v7  ;;  %v757_v57 = vshll.u32 %v1981_v16, %v755_v7  ;;  %v951_v38 = vsel %vm949_vm10, %v950_v25, %v1993_v42 }
 0x173   :  { %v1238_v21 = vpop.eup %1237  ;;  %v1096_v63 = vxor.u32 2147483648, %v1236_v51  ;;  %v952_v23 = vadd.s32 %v951_v38, %v947_v27  ;;  %v770_v44 = vsub.s32 4, %v1965_v33  ;;  %vm686_vm11 = vcmp.lt.s32.totalorder %v1829_v36, 0 }
 0x174   :  { %v1093_v40 = vxor.u32 2147483648, %v1238_v21  ;;  %v758_v26 = vshrl.u32 %v740_v48, %v756_v20  ;;  %v761_v6 = vadd.s32 127, %v760_v9  ;;  %vm685_vm12 = vcmp.le.f32.partialorder %v684_v28, 0.7853982 }
 0x175   :  { %v1097_v18 = vsel %vm1095_vm6, %v1096_v63, %v1238_v21  ;;  %v953_v29 = vadd.s32 536870912, %v952_v23  ;;  %v771_v49 = vsel %vm686_vm11, %v770_v44, %v1965_v33  ;;  %v948_v8 = vadd.s32 %v1992_v22, %v1996_v4 }
 0x176   :  { %v1094_v0 = vsel %vm1092_vm8, %v1236_v51, %v1093_v40  ;;  %v759_v52 = vor.u32 %v758_v26, %v757_v57  ;;  %v762_v32 = vshll.u32 %v761_v6, 23  ;;  %v773_v1 = vsel %vm685_vm12, 0, %v771_v49 }
 0x177   :  { %v1098_v61 = vsel %vm1091_vm7, %v1094_v0, %v1097_v18  ;;  %v954_v16 = vshrl.u32 %v953_v29, 30  ;;  %v777_v3 = vadd.s32 3, %v773_v1  ;;  %vm776_vm1 = vweird.f32 %v1829_v36 }
 0x178   :  { %v1099_v13 = vsel %vm1088_vm9, nan, %v1098_v61  ;;  %v763_v60 = vor.u32 4788187, %v762_v32  ;;  %v766_v10 = vcvt.s32.f32 %v759_v52  ;;  %vm894_vm2 = vcmp.lt.s32.totalorder %v1890_v12, 0 }
 0x179   :  { %1107 = vst [vmem:[#allocation2 + $0x38] sm:$0xff] %v1099_v13  ;;  %v955_v17 = vshll.u32 %v954_v16, 30  ;;  %v778_v43 = vand.u32 3, %v777_v3  ;;  %v978_v63 = vsub.s32 4, %v954_v16  ;;  %vm893_vm3 = vcmp.le.f32.partialorder %v892_v34, 0.7853982 }
 0x17a   :  { %v764_v31 = vand.u32 2147483647, %v763_v60  ;;  %vm984_vm7 = vweird.f32 %v1890_v12 }
 0x17b   :  { %v956_v54 = vsub.s32 %v952_v23, %v955_v17  ;;  %vm783_vm14 = vcmp.eq.s32.totalorder %v778_v43, 2  ;;  %vm780_vm15 = vcmp.eq.s32.totalorder %v778_v43, 0  ;;  %vm779_vm0 = vcmp.lt.s32.totalorder %v778_v43, 2 }
 0x17c   :  { %v767_v41 = vmul.f32 %v766_v10, %v764_v31  ;;  %v979_v40 = vsel %vm894_vm2, %v978_v63, %v954_v16 }
 0x17d   :  { %v958_v62 = vsub.s32 0, %v956_v54 }
 0x17e   :  { %v768_v30 = vxor.u32 2147483648, %v767_v41 }
 0x17f   :  { %v1155_v55 = vmin.u32 %v958_v62, %v956_v54 }
 0x180   :  { %v769_v47 = vsel %vm686_vm11, %v768_v30, %v767_v41 }
 0x181   :  { %v772_v45 = vsel %vm685_vm12, %v1829_v36, %v769_v47  ;;  %v960_v35 = vclz %v1155_v55  ;;  %v981_v36 = vsel %vm893_vm3, 0, %v979_v40 }
 0x182   :  { %1239 = vcosq.f32 %v772_v45  ;;  %v985_v9 = vadd.s32 3, %v981_v36 }
 0x183   :  { %1241 = vsinq.f32 %v772_v45  ;;  %v1156_v46 = vadd.s32 4294967294, %v960_v35 }
 0x184   :  { %v986_v39 = vand.u32 3, %v985_v9 }
 0x185   :  { %vm1157_vm13 = vcmp.lt.s32.totalorder %v1156_v46, 0 }
 0x186   :  { %v963_v19 = vsel %vm1157_vm13, 0, %v1156_v46  ;;  %vm991_vm4 = vcmp.eq.s32.totalorder %v986_v39, 2  ;;  %vm988_vm5 = vcmp.eq.s32.totalorder %v986_v39, 0  ;;  %vm987_vm6 = vcmp.lt.s32.totalorder %v986_v39, 2 }
 0x187   :  { %v964_v24 = vsub.s32 32, %v963_v19  ;;  %v968_v28 = vsub.s32 4294967266, %v963_v19  ;;  %v965_v56 = vshll.u32 %v956_v54, %v963_v19 }
 0x189   :  { %v966_v5 = vshrl.u32 %v948_v8, %v964_v24  ;;  %v969_v59 = vadd.s32 127, %v968_v28 }
 0x18b   :  { %v967_v11 = vor.u32 %v966_v5, %v965_v56  ;;  %v970_v2 = vshll.u32 %v969_v59, 23 }
 0x18c   :  { %v1240_v37 = vpop.eup %1239 }
 0x18d   :  { %v1242_v50 = vpop.eup %1241  ;;  %v784_v33 = vxor.u32 2147483648, %v1240_v37  ;;  %v971_v22 = vor.u32 4788187, %v970_v2  ;;  %v974_v4 = vcvt.s32.f32 %v967_v11 }
 0x18e   :  { %v781_v15 = vxor.u32 2147483648, %v1242_v50 }
 0x18f   :  { %v785_v53 = vsel %vm783_vm14, %v784_v33, %v1242_v50  ;;  %v972_v58 = vand.u32 2147483647, %v971_v22 }
 0x190   :  { %v782_v14 = vsel %vm780_vm15, %v1240_v37, %v781_v15 }
 0x191   :  { %v786_v42 = vsel %vm779_vm0, %v782_v14, %v785_v53  ;;  %v975_v21 = vmul.f32 %v974_v4, %v972_v58 }
 0x192   :  { %v787_v51 = vsel %vm776_vm1, nan, %v786_v42 }
 0x193   :  { %1104 = vst [vmem:[#allocation2 + $0x20] sm:$0xff] %v787_v51  ;;  %v976_v48 = vxor.u32 2147483648, %v975_v21 }
 0x195   :  { %v977_v7 = vsel %vm894_vm2, %v976_v48, %v975_v21 }
 0x196   :  { %v980_v20 = vsel %vm893_vm3, %v1890_v12, %v977_v7 }
 0x197   :  { %1243 = vcosq.f32 %v980_v20 }
 0x198   :  { %1245 = vsinq.f32 %v980_v20 }
 0x1a1   :  { %v1244_v18 = vpop.eup %1243 }
 0x1a2   :  { %v1246_v25 = vpop.eup %1245  ;;  %v992_v0 = vxor.u32 2147483648, %v1244_v18 }
 0x1a3   :  { %v989_v57 = vxor.u32 2147483648, %v1246_v25 }
 0x1a4   :  { %v993_v26 = vsel %vm991_vm4, %v992_v0, %v1246_v25 }
 0x1a5   :  { %v990_v34 = vsel %vm988_vm5, %v1244_v18, %v989_v57 }
 0x1a6   :  { %v994_v6 = vsel %vm987_vm6, %v990_v34, %v993_v26 }
 0x1a7   :  { %v995_v61 = vsel %vm984_vm7, nan, %v994_v6 }
 0x1a8   :  { %1106 = vst [vmem:[#allocation2 + $0x30] sm:$0xff] %v995_v61 }
 0x1a9   :  { %1261 = shalt.err (!%p1258_p4)
}
 0x1aa   :  { %s1262_s24 = scalar_lea.hbm %s2035_s4, 1024 }
 0x1ab   :  { %p1263_p5 = scmp.ne.s32.totalorder %s2035_s4, %s1262_s24  ;;  %p1266_p6 = scmp.lt.u32.totalorder %s1262_s24, %s2035_s4 }
 0x1ad   :  { %p1268_p7 = pnand %p1266_p6, %p1263_p5 }
 0x1af   :  { %1271 = shalt.err (!%p1268_p7)
}
 0x1b0   :  { %s1285_s29 = smov 128   ;;  %s1286_s30 = smov 8  }
 0x1b1   :  { %1119 = dma.vmem_to_hbm [thread:$0]  %s1114_s20, 1024, %s2035_s4, [#allocation3], %s1285_s29, %s1285_s29, %s1286_s30  }
 0x1b2   :  { %1272 = dma.done.wait [#allocation3], 1024  }
 0x1b3   :  { %1273 = vsyncadd [#allocation3], 4294966272 }
 0x1b4   :  { %1123 = vsyncpa [#allocation3], 1 }

</bundles_post_ra>
